<compile_context>
chip_gen: v5e
topology: v5e:2x2
jax: 0.10.0
libtpu: 0.0.40
codegen_flags: <defaults>
</compile_context>

<pallas_src>
import functools

import jax
import jax.numpy as jnp
from jax import lax
from jax.experimental import pallas as pl
from jax.experimental.pallas import tpu as pltpu


def _round_up(x, m):
    return (x + m - 1) // m * m


def _ce_loss_kernel(idx_ref, t_ref, partial_ref, *, n_valid, tile_n):
    """Partial (masked) sum of per-row NLL for one tile of rows.

    idx_ref     : (tile_n, 2) int32   col 0 = input ids, col 1 = target ids
    t_ref       : (C, C)      f32     folded table T = E @ W^T (resident)
    partial_ref : (8, 128)    f32     partial sum in [0, 0], zeros elsewhere
    """
    i = pl.program_id(0)
    c = t_ref.shape[1]

    idx = idx_ref[...]                                          # (tn, 2) i32
    in_idx = idx[:, 0:1]                                        # (tn, 1)
    tgt_idx = idx[:, 1:2]                                       # (tn, 1)

    class_iota = lax.broadcasted_iota(jnp.int32, (tile_n, c), 1)

    # Row-select from the folded C x C table via an exact 0/1 one-hot on the
    # MXU: onehot(in_idx) @ T  ==  E[in_idx] @ W^T  (bit-identical selection).
    onehot_in = (class_iota == in_idx).astype(t_ref.dtype)      # (tn, C)
    logits = jnp.dot(onehot_in, t_ref[...],
                     preferred_element_type=jnp.float32)        # (tn, C)

    # Numerically-stable log-softmax + NLL; target logit picked with an iota
    # compare (no materialized one-hot for the target).
    m = jnp.max(logits, axis=-1, keepdims=True)
    lse = m + jnp.log(jnp.sum(jnp.exp(logits - m), axis=-1, keepdims=True))
    tgt_logit = jnp.sum(jnp.where(class_iota == tgt_idx, logits, 0.0),
                        axis=-1, keepdims=True)
    nll = lse - tgt_logit                                       # (tn, 1)

    # Mask padded rows, reduce the tile to one scalar partial sum.
    row = i * tile_n + lax.broadcasted_iota(jnp.int32, (tile_n, 1), 0)
    partial = jnp.sum(jnp.where(row < n_valid, nll, 0.0))       # scalar

    # Lane-dense (8, 128) writeback: partial in element [0, 0], zeros elsewhere.
    r8 = lax.broadcasted_iota(jnp.int32, (8, 128), 0)
    c128 = lax.broadcasted_iota(jnp.int32, (8, 128), 1)
    partial_ref[...] = jnp.where((r8 == 0) & (c128 == 0), partial, 0.0)


def make_ce_loss(embedding, lin_out_layer, *, tile_n=512):
    """Returns loss_fn(input_indices, target_indices).

    The folded logits table T = E @ W^T is computed ONCE here (hoisted out of
    the per-call path); the kernel only selects rows, log-softmaxes, and
    reduces.
    """
    C, H = lin_out_layer.shape
    del H
    table = jnp.dot(embedding.astype(jnp.float32),
                    jnp.transpose(lin_out_layer.astype(jnp.float32)))  # (C, C)

    @jax.jit
    def loss_fn(input_indices, target_indices):
        n = input_indices.shape[0]
        tn = max(8, min(tile_n, _round_up(n, 8)))
        n_pad = _round_up(n, tn)
        grid_n = n_pad // tn

        # Pack both id streams into one (n_pad, 2) array -> one DMA per step.
        idx = jnp.zeros((n_pad, 2), jnp.int32)
        idx = idx.at[:n, 0].set(input_indices.astype(jnp.int32))
        idx = idx.at[:n, 1].set(target_indices.astype(jnp.int32))

        kernel = functools.partial(_ce_loss_kernel, n_valid=n, tile_n=tn)
        partials = pl.pallas_call(
            kernel,
            out_shape=jax.ShapeDtypeStruct((grid_n * 8, 128), jnp.float32),
            grid=(grid_n,),
            in_specs=[
                pl.BlockSpec((tn, 2), lambda i: (i, 0)),   # packed ids
                pl.BlockSpec((C, C), lambda i: (0, 0)),    # folded table (resident)
            ],
            out_specs=pl.BlockSpec((8, 128), lambda i: (i, 0)),
            compiler_params=pltpu.CompilerParams(
                dimension_semantics=("parallel",),
                vmem_limit_bytes=32 * 1024 * 1024),
        )(idx, table)

        # Mean over the true (unpadded) number of samples; grid_n-length sum
        # of partials is negligible.
        return jnp.sum(partials) / n

    return loss_fn


def ce_loss_reference(embedding, lin_out_layer, input_indices, target_indices):
    y = jnp.take(embedding, input_indices, axis=0).astype(jnp.float32)  # (N,H)
    logits = (lin_out_layer.astype(jnp.float32) @ y.T).T                # (N,C)
    logp = jax.nn.log_softmax(logits, axis=-1)
    nll = -jnp.take_along_axis(logp, target_indices[:, None], axis=-1)[:, 0]
    return jnp.mean(nll)


if __name__ == "__main__":
    num_chars = 32      # len(chars)
    hidden_size = 3     # as in the source script
    seq = 20            # number of (input, target) bigram pairs

    key = jax.random.PRNGKey(0)
    k_emb, k_lin, k_in, k_tgt = jax.random.split(key, 4)

    # nn.Embedding -> normal init; lin_out_layer = torch.rand -> uniform [0, 1)
    embedding = jax.random.normal(k_emb, (num_chars, hidden_size), jnp.float32)
    lin_out_layer = jax.random.uniform(k_lin, (num_chars, hidden_size),
                                       jnp.float32)

    input_indices = jax.random.randint(k_in, (seq,), 0, num_chars, jnp.int32)
    target_indices = jax.random.randint(k_tgt, (seq,), 0, num_chars, jnp.int32)

    ref = ce_loss_reference(embedding, lin_out_layer, input_indices,
                            target_indices)

    # Default tiling (single tile at this toy size).
    loss_fn = make_ce_loss(embedding, lin_out_layer)
    loss = jax.block_until_ready(loss_fn(input_indices, target_indices))
    assert jnp.allclose(loss, ref, atol=1e-5, rtol=1e-5), (loss, ref)

    # Small tiles so the toy run also exercises a multi-step "parallel" grid
    # plus padded-row masking (20 rows -> 3 tiles of 8 with 4 masked rows).
    loss_fn_small = make_ce_loss(embedding, lin_out_layer, tile_n=8)
    loss_small = jax.block_until_ready(
        loss_fn_small(input_indices, target_indices))
    assert jnp.allclose(loss_small, ref, atol=1e-5, rtol=1e-5), (loss_small, ref)

    print("KERNEL_OK")
</pallas_src>

<mosaic_0001>
module attributes {stable_mosaic.version = 11 : i64} {
  func.func @_ce_loss_kernel(%arg0: i32, %arg1: memref<24x2xi32, #tpu.memory_space<vmem>>, %arg2: memref<32x32xf32, #tpu.memory_space<vmem>>, %arg3: memref<8x128xf32, #tpu.memory_space<vmem>>) attributes {dimension_semantics = [#tpu.dimension_semantics<parallel>], iteration_bounds = array<i64: 1>, scalar_prefetch = 0 : i64, scratch_operands = 0 : i64, tpu.core_type = #tpu.core_type<tc>, window_params = [{transform_indices = @transform_0, window_bounds = array<i64: 24, 2>}, {pipeline_mode = #tpu.pipeline_mode<synchronous>, transform_indices = @transform_1, window_bounds = array<i64: 32, 32>}, {transform_indices = @transform_2, window_bounds = array<i64: 8, 128>}]} {
    %c0 = arith.constant 0 : index
    %c0_0 = arith.constant 0 : index
    %0 = vector.load %arg1[%c0, %c0_0] : memref<24x2xi32, #tpu.memory_space<vmem>>, vector<24x2xi32>
    %1 = vector.extract_strided_slice %0 {offsets = [0, 0], sizes = [24, 1], strides = [1, 1]} : vector<24x2xi32> to vector<24x1xi32>
    %2 = vector.extract_strided_slice %0 {offsets = [0, 1], sizes = [24, 1], strides = [1, 1]} : vector<24x2xi32> to vector<24x1xi32>
    %3 = tpu.iota {dimensions = array<i32: 1>} : vector<24x32xi32>
    %4 = vector.broadcast %1 : vector<24x1xi32> to vector<24x32xi32>
    %5 = arith.cmpi eq, %3, %4 : vector<24x32xi32>
    %6 = arith.extui %5 : vector<24x32xi1> to vector<24x32xi32>
    %7 = arith.sitofp %6 : vector<24x32xi32> to vector<24x32xf32>
    %c0_1 = arith.constant 0 : index
    %c0_2 = arith.constant 0 : index
    %8 = vector.load %arg2[%c0_1, %c0_2] : memref<32x32xf32, #tpu.memory_space<vmem>>, vector<32x32xf32>
    %cst = arith.constant dense<0.000000e+00> : vector<24x32xf32>
    %9 = tpu.matmul %7, %8, %cst {dimension_numbers = #tpu.dot_dimension_numbers<[1], [0], [0], [1], [0, 0, 1, 1], [], []>} : vector<24x32xf32>, vector<32x32xf32>, vector<24x32xf32> -> vector<24x32xf32>
    %cst_3 = arith.constant dense<0xFF800000> : vector<24xf32>
    %10 = vector.multi_reduction <maximumf>, %9, %cst_3 [1] : vector<24x32xf32> to vector<24xf32>
    %11 = vector.shape_cast %10 : vector<24xf32> to vector<24x1xf32>
    %12 = vector.broadcast %11 : vector<24x1xf32> to vector<24x32xf32>
    %13 = arith.subf %9, %12 : vector<24x32xf32>
    %14 = math.exp %13 : vector<24x32xf32>
    %cst_4 = arith.constant dense<0.000000e+00> : vector<24xf32>
    %15 = vector.multi_reduction <add>, %14, %cst_4 [1] : vector<24x32xf32> to vector<24xf32>
    %16 = vector.shape_cast %15 : vector<24xf32> to vector<24x1xf32>
    %17 = math.log %16 : vector<24x1xf32>
    %18 = arith.addf %11, %17 : vector<24x1xf32>
    %19 = vector.broadcast %2 : vector<24x1xi32> to vector<24x32xi32>
    %20 = arith.cmpi eq, %3, %19 : vector<24x32xi32>
    %cst_5 = arith.constant 0.000000e+00 : f32
    %21 = vector.broadcast %cst_5 : f32 to vector<24x32xf32>
    %22 = arith.select %20, %9, %21 : vector<24x32xi1>, vector<24x32xf32>
    %cst_6 = arith.constant dense<0.000000e+00> : vector<24xf32>
    %23 = vector.multi_reduction <add>, %22, %cst_6 [1] : vector<24x32xf32> to vector<24xf32>
    %24 = vector.shape_cast %23 : vector<24xf32> to vector<24x1xf32>
    %25 = arith.subf %18, %24 : vector<24x1xf32>
    %c24_i32 = arith.constant 24 : i32
    %26 = arith.muli %arg0, %c24_i32 : i32
    %27 = tpu.iota {dimensions = array<i32: 0>} : vector<24x1xi32>
    %28 = vector.broadcast %26 : i32 to vector<24x1xi32>
    %29 = arith.addi %28, %27 : vector<24x1xi32>
    %c20_i32 = arith.constant 20 : i32
    %30 = vector.broadcast %c20_i32 : i32 to vector<24x1xi32>
    %31 = arith.cmpi slt, %29, %30 : vector<24x1xi32>
    %cst_7 = arith.constant 0.000000e+00 : f32
    %32 = vector.broadcast %cst_7 : f32 to vector<24x1xf32>
    %33 = arith.select %31, %25, %32 : vector<24x1xi1>, vector<24x1xf32>
    %34 = vector.shape_cast %33 : vector<24x1xf32> to vector<1x24x1xf32>
    %cst_8 = arith.constant dense<0.000000e+00> : vector<1xf32>
    %35 = vector.multi_reduction <add>, %34, %cst_8 [1, 2] : vector<1x24x1xf32> to vector<1xf32>
    %36 = vector.shape_cast %35 : vector<1xf32> to vector<1x1x1xf32>
    %37 = vector.extract %36[0, 0, 0] : f32 from vector<1x1x1xf32>
    %38 = tpu.iota {dimensions = array<i32: 0>} : vector<8x128xi32>
    %39 = tpu.iota {dimensions = array<i32: 1>} : vector<8x128xi32>
    %c0_i32 = arith.constant 0 : i32
    %40 = vector.broadcast %c0_i32 : i32 to vector<8x128xi32>
    %41 = arith.cmpi eq, %38, %40 : vector<8x128xi32>
    %c0_i32_9 = arith.constant 0 : i32
    %42 = vector.broadcast %c0_i32_9 : i32 to vector<8x128xi32>
    %43 = arith.cmpi eq, %39, %42 : vector<8x128xi32>
    %44 = arith.andi %41, %43 : vector<8x128xi1>
    %cst_10 = arith.constant 0.000000e+00 : f32
    %45 = vector.broadcast %37 : f32 to vector<8x128xf32>
    %46 = vector.broadcast %cst_10 : f32 to vector<8x128xf32>
    %47 = arith.select %44, %45, %46 : vector<8x128xi1>, vector<8x128xf32>
    %c0_11 = arith.constant 0 : index
    %c0_12 = arith.constant 0 : index
    %48 = vector.load %arg3[%c0_11, %c0_12] : memref<8x128xf32, #tpu.memory_space<vmem>>, vector<8x128xf32>
    tpu.vector_store %arg3[%c0_11, %c0_12], %47 {strides = array<i32>} : memref<8x128xf32, #tpu.memory_space<vmem>>, vector<8x128xf32>,
    return
  }
  func.func @transform_0(%arg0: i32) -> (i32, i32) {
    %c0_i32 = arith.constant 0 : i32
    %c0_i32_0 = arith.constant 0 : i32
    return %arg0, %c0_i32 : i32, i32
  }
  func.func @transform_1(%arg0: i32) -> (i32, i32) {
    %c0_i32 = arith.constant 0 : i32
    %c0_i32_0 = arith.constant 0 : i32
    %c0_i32_1 = arith.constant 0 : i32
    return %c0_i32, %c0_i32_0 : i32, i32
  }
  func.func @transform_2(%arg0: i32) -> (i32, i32) {
    %c0_i32 = arith.constant 0 : i32
    %c0_i32_0 = arith.constant 0 : i32
    return %arg0, %c0_i32 : i32, i32
  }
}

</mosaic_0001>

<bundles_post_ra>
// kernel: loss_fn.1
= control target key start
LH: loop header
LB: loop body
LE: loop exit
PB: predicated region body
PF: predicated region fallthrough
CT: control target
= control target key end

     0   :  { %v212_v0 = vmov 0   ;;  %v213_v8 = vmov 1   ;;  %v14_v9 = vlaneseq  ;;  %vm38_vm0 = vcmask 261120   ;;  %s277_s0 = inlined_call_operand.vmem [shape: s32[24,2], index: 0, kind: input, shape index: {}]   ;;  %s278_s1 = inlined_call_operand.vmem [shape: f32[32,32], index: 1, kind: input, shape index: {}]   ;;  %s279_s2 = inlined_call_operand.vmem [shape: f32[8,128], index: 2, kind: output, shape index: {}]  }
   0x1   :  { %197 = vset.pattern.permute.xlu1 %v212_v0  ;;  %196 = vset.pattern.permute.xlu0 %v212_v0  ;;  %v13_v1 = vld [vmem:[%s277_s0 + $0x10] sm:$0xff]  ;;  %v12_v2 = vld [vmem:[%s277_s0 + $0x8] sm:$0xff]  ;;  %v37_v3 = vld [vmem:[%s278_s1 + $0x18] sm:$0xff]  ;;  %v214_v13 = vmov 0.0   ;;  %vm152_vm7 = vcmask 7168  }
   0x2   :  { %23 = vperm.xlu0 %196, %v13_v1   ;;  %20 = vperm.xlu1 %197, %v12_v2   ;;  %v36_v4 = vld [vmem:[%s278_s1 + $0x10] sm:$0xff]  ;;  %v35_v5 = vld [vmem:[%s278_s1 + $0x8] sm:$0xff]  ;;  %v11_v6 = vld [vmem:[%s277_s0] sm:$0xff]  ;;  %v252_v10 = vand.u32 127, %v14_v9  ;;  %v139_v57 = vshrl.u32 %v14_v9, 7 }
   0x3   :  { %183 = vmatpush.msra.mxu1 %v37_v3  ;;  %184 = vmatpush.msra.mxu2 %v37_v3  ;;  %v34_v7 = vld [vmem:[%s278_s1] sm:$0xff] }
   0x4   :  { %60 = vmatpush.msra.mxu0 %v37_v3  ;;  %199 = vset.pattern.permute.xlu2 %v213_v8  ;;  %v141_v62 = vadd.s32 16, %v139_v57  ;;  %vm167_vm9 = vcmp.eq.s32.totalorder %v139_v57, 0  ;;  %vm168_vm10 = vcmp.eq.s32.totalorder %v252_v10, 0 }
   0x5   :  { %185 = vmatpush.msra.mxu1 %v36_v4  ;;  %186 = vmatpush.msra.mxu2 %v36_v4  ;;  %vm169_vm11 = vmand %vm167_vm9, %vm168_vm10 }
   0x6   :  { %61 = vmatpush.msra.mxu0 %v36_v4  ;;  %vm148_vm8 = vcmp.lt.s32.totalorder %v141_v62, 20 }
   0x7   :  { %187 = vmatpush.msra.mxu1 %v35_v5  ;;  %188 = vmatpush.msra.mxu2 %v35_v5 }
   0x8   :  { %62 = vmatpush.msra.mxu0 %v35_v5 }
   0x9   :  { %189 = vmatpush.msra.mxu1 %v34_v7  ;;  %190 = vmatpush.msra.mxu2 %v34_v7 }
   0xa   :  { %17 = vperm.xlu0 %196, %v11_v6   ;;  %63 = vmatpush.msra.mxu0 %v34_v7 }
  0x12   :  { %198 = vset.pattern.permute.xlu0 %v213_v8 }
  0x13   :  { %111 = vperm.xlu0 %198, %v11_v6  }
  0x1b   :  { %117 = vperm.xlu0 %198, %v13_v1  }
  0x74   :  { %v24_v11 = vpop.permute.xlu0 %23  ;;  %v21_v12 = vpop.permute.xlu1 %20 }
  0x75   :  { %vm27_vm1 = vcmp.eq.s32.totalorder %v252_v10, %v24_v11  ;;  %vm26_vm2 = vcmp.eq.s32.totalorder %v252_v10, %v21_v12 }
  0x76   :  { %v179_v14 = vsel %vm27_vm1, 1.0, %v214_v13  ;;  %v178_v15 = vsel %vm26_vm2, 1.0, %v214_v13 }
  0x77   :  { %181 = vmatmul.msk.f32.vlgmr.msra.gmra.mxu1 %vm38_vm0, %v178_v15  ;;  %182 = vmatmul.msk.f32.vlgmr.msra.gmra.mxu2 %vm38_vm0, %v179_v14 }
  0x7c   :  { %v18_v16 = vpop.permute.xlu0 %17 }
  0x7d   :  { %vm25_vm3 = vcmp.eq.s32.totalorder %v252_v10, %v18_v16 }
  0x7e   :  { %v177_v17 = vsel %vm25_vm3, 1.0, %v214_v13 }
  0x7f   :  { %180 = vmatmul.msk.f32.vlgmr.msra.gmra.mxu0 %vm38_vm0, %v177_v17 }
  0x85   :  { %v112_v24 = vpop.permute.xlu0 %111 }
  0x86   :  { %vm119_vm4 = vcmp.eq.s32.totalorder %v252_v10, %v112_v24 }
  0x8d   :  { %v118_v44 = vpop.permute.xlu0 %117 }
  0x8e   :  { %vm121_vm6 = vcmp.eq.s32.totalorder %v252_v10, %v118_v44 }
  0xf4   :  { %v68_v18 = vpop.f32.mrf.mxu1 }
  0xf5   :  { %v77_v19 = vsel %vm38_vm0, %v68_v18, -inf }
  0xf6   :  { %78 = vmax.xlane.f32.xlu2 %v77_v19 }
  0xfa   :  { %v71_v20 = vpop.f32.mrf.mxu2 }
  0xfb   :  { %v80_v21 = vsel %vm38_vm0, %v71_v20, -inf  ;;  %v124_v46 = vsel %vm121_vm6, %v71_v20, 0.0 }
  0xfc   :  { %v65_v22 = vpop.f32.mrf.mxu0  ;;  %v131_v47 = vsel %vm38_vm0, %v124_v46, 0.0 }
  0xfd   :  { %v74_v23 = vsel %vm38_vm0, %v65_v22, -inf  ;;  %v122_v25 = vsel %vm119_vm4, %v65_v22, 0.0 }
  0xfe   :  { %81 = vmax.xlane.f32.xlu2 %v80_v21  ;;  %75 = vmax.xlane.f32.xlu1 %v74_v23  ;;  %v125_v26 = vsel %vm38_vm0, %v122_v25, 0.0 }
 0x106   :  { %126 = vadd.xlane.f32.xlu1 %v125_v26 }
 0x116   :  { %114 = vperm.xlu2 %199, %v12_v2  }
 0x169   :  { %v79_v27 = vpop.xlane.xlu2 %78 }
 0x16a   :  { %v84_v28 = vsub.f32 %v68_v18, %v79_v27 }
 0x16c   :  { %v88_v29 = vmul.f32 1.442695, %v84_v28 }
 0x16e   :  { %200 = vpow2.f32 %v88_v29 }
 0x171   :  { %v82_v30 = vpop.xlane.xlu2 %81  ;;  %v76_v31 = vpop.xlane.xlu1 %75 }
 0x172   :  { %v85_v32 = vsub.f32 %v71_v20, %v82_v30  ;;  %v83_v33 = vsub.f32 %v65_v22, %v76_v31 }
 0x174   :  { %v201_v34 = vpop.eup %200  ;;  %v90_v35 = vmul.f32 1.442695, %v85_v32  ;;  %v86_v36 = vmul.f32 1.442695, %v83_v33 }
 0x175   :  { %v95_v37 = vsel %vm38_vm0, %v201_v34, 0.0 }
 0x176   :  { %202 = vpow2.f32 %v90_v35  ;;  %96 = vadd.xlane.f32.xlu2 %v95_v37 }
 0x177   :  { %204 = vpow2.f32 %v86_v36 }
 0x179   :  { %v115_v39 = vpop.permute.xlu2 %114  ;;  %v127_v48 = vpop.xlane.xlu1 %126 }
 0x17a   :  { %vm120_vm5 = vcmp.eq.s32.totalorder %v252_v10, %v115_v39 }
 0x17b   :  { %v123_v43 = vsel %vm120_vm5, %v68_v18, 0.0 }
 0x17c   :  { %v203_v38 = vpop.eup %202  ;;  %v128_v45 = vsel %vm38_vm0, %v123_v43, 0.0 }
 0x17d   :  { %v205_v40 = vpop.eup %204  ;;  %v98_v41 = vsel %vm38_vm0, %v203_v38, 0.0 }
 0x17e   :  { %v92_v42 = vsel %vm38_vm0, %v205_v40, 0.0  ;;  %99 = vadd.xlane.f32.xlu1 %v98_v41 }
 0x17f   :  { %93 = vadd.xlane.f32.xlu0 %v92_v42 }
 0x186   :  { %129 = vadd.xlane.f32.xlu1 %v128_v45 }
 0x18e   :  { %132 = vadd.xlane.f32.xlu1 %v131_v47 }
 0x1e9   :  { %v97_v49 = vpop.xlane.xlu2 %96 }
 0x1ea   :  { %206 = vlog2.f32 %v97_v49 }
 0x1f0   :  { %v207_v52 = vpop.eup %206 }
 0x1f1   :  { %v100_v50 = vpop.xlane.xlu1 %99  ;;  %v104_v55 = vmul.f32 0.6931472, %v207_v52 }
 0x1f2   :  { %208 = vlog2.f32 %v100_v50  ;;  %v94_v51 = vpop.xlane.xlu0 %93 }
 0x1f3   :  { %210 = vlog2.f32 %v94_v51  ;;  %v108_v61 = vadd.f32 %v104_v55, %v79_v27 }
 0x1f8   :  { %v209_v53 = vpop.eup %208 }
 0x1f9   :  { %v211_v54 = vpop.eup %210  ;;  %v130_v56 = vpop.xlane.xlu1 %129  ;;  %v106_v59 = vmul.f32 0.6931472, %v209_v53 }
 0x1fa   :  { %v102_v58 = vmul.f32 0.6931472, %v211_v54  ;;  %v135_v0 = vsub.f32 %v108_v61, %v130_v56 }
 0x1fb   :  { %v109_v1 = vadd.f32 %v106_v59, %v82_v30 }
 0x1fc   :  { %v107_v60 = vadd.f32 %v102_v58, %v76_v31  ;;  %v154_v5 = vsel %vm152_vm7, %v135_v0, 0.0 }
 0x1fe   :  { %v134_v63 = vsub.f32 %v107_v60, %v127_v48 }
 0x200   :  { %v153_v3 = vsel %vm152_vm7, %v134_v63, 0.0 }
 0x201   :  { %v133_v2 = vpop.xlane.xlu1 %132  ;;  %v155_v7 = vadd.f32 %v154_v5, %v153_v3 }
 0x202   :  { %v136_v4 = vsub.f32 %v109_v1, %v133_v2 }
 0x204   :  { %v151_v6 = vsel %vm148_vm8, %v136_v4, 0.0 }
 0x205   :  { %v156_v8 = vsel %vm152_vm7, %v151_v6, 0.0 }
 0x206   :  { %v157_v11 = vadd.f32 %v156_v8, %v155_v7 }
 0x208   :  { %158 = vadd.xlane.f32.xlu2 %v157_v11 }
 0x27b   :  { %v159_v9 = vpop.xlane.xlu2 %158 }
 0x27c   :  { %v160_v12 = vrot.slane %v159_v9, 4 }
 0x27e   :  { %v161_v13 = vadd.f32 %v160_v12, %v159_v9 }
 0x280   :  { %v162_v14 = vrot.slane %v161_v13, 2 }
 0x282   :  { %v163_v15 = vadd.f32 %v162_v14, %v161_v13 }
 0x284   :  { %v164_v16 = vrot.slane %v163_v15, 1 }
 0x286   :  { %v165_v17 = vadd.f32 %v164_v16, %v163_v15 }
 0x288   :  { %191 = vpush %v165_v17 }
 0x2b9   :  { %s192_s0 = spop %191 }
 0x2ba   :  { %v170_v18 = vstv %s192_s0 }
 0x2bb   :  { %v171_v19 = vsel %vm169_vm11, %v170_v18, 0.0 }
 0x2bc   :  { %172 = vst [vmem:[%s279_s2] sm:$0xff] %v171_v19 }

</bundles_post_ra>
